<compile_context>
chip_gen: v7x
topology: tpu7x:2x2x1
jax: 0.10.0
libtpu: 0.0.40
codegen_flags: <defaults>
</compile_context>

<pallas_src>
import math

import jax
import jax.numpy as jnp
from jax.experimental import pallas as pl
from jax.experimental.pallas import tpu as pltpu


# ----------------------------------------------------------------------------
# Kernels
# ----------------------------------------------------------------------------
def _posenc_kernel_full_batch(x_ref, pe_ref, o_ref):
    # x_ref/o_ref: (B, TS, TD), pe_ref: (TS, TD) -> broadcast over batch in-kernel.
    o_ref[...] = x_ref[...] + pe_ref[...][None]


def _posenc_kernel_batch_inner(x_ref, pe_ref, o_ref):
    # Batch dim squeezed by BlockSpec (None); both refs are (TS, TD).
    o_ref[...] = x_ref[...] + pe_ref[...]


# ----------------------------------------------------------------------------
# Wrapper
# ----------------------------------------------------------------------------
def positional_encoding_forward(
    x,
    pe,
    *,
    seq_tile_cap=256,
    feat_tile_cap=1024,
    batch_block_budget_bytes=2 * 1024 * 1024,
):
    """x: (B, S, D), pe: (max_len, D) with max_len >= S  ->  (B, S, D)."""
    B, S, D = x.shape
    assert pe.shape[1] == D and pe.shape[0] >= S, "pe table too small for input"

    # Match x's dtype host-side (no mixed-precision promotion in-kernel, and
    # half the PE-table HBM bytes when x is bf16/fp16).
    pe = pe.astype(x.dtype)

    itemsize = jnp.dtype(x.dtype).itemsize

    # Tile sizes: full dim when small (full-dim blocks satisfy the (8,128)
    # rule), otherwise a lane/sublane-friendly cap.
    TS = S if S <= seq_tile_cap else seq_tile_cap   # multiple of 8 when capped
    TD = D if D <= feat_tile_cap else feat_tile_cap  # multiple of 128 when capped

    # Rare ragged-seq case: TS is neither a multiple of 8 nor pe's full first
    # dim -> slice pe so the block equals its full dim (keeps the (8,128) rule).
    if (TS % 8 != 0) and (TS != pe.shape[0]):
        pe = pe[:S]

    n_s = pl.cdiv(S, TS)
    n_d = pl.cdiv(D, TD)

    compiler_kwargs = dict(vmem_limit_bytes=32 * 1024 * 1024)

    if B * TS * TD * itemsize <= batch_block_budget_bytes:
        # --- Full batch covered inside one block: pe fetched once per (s,d)
        # tile, per-grid-step overhead amortized over B x more bytes. ---
        grid = (n_s, n_d)
        return pl.pallas_call(
            _posenc_kernel_full_batch,
            out_shape=jax.ShapeDtypeStruct((B, S, D), x.dtype),
            grid=grid,
            in_specs=[
                pl.BlockSpec((B, TS, TD), lambda s, d: (0, s, d)),
                pl.BlockSpec((TS, TD), lambda s, d: (s, d)),
            ],
            out_specs=pl.BlockSpec((B, TS, TD), lambda s, d: (0, s, d)),
            compiler_params=pltpu.CompilerParams(
                dimension_semantics=("parallel", "parallel"),
                **compiler_kwargs,
            ),
        )(x, pe)

    # --- Large batch: batch as the INNERMOST grid axis so the pe block index
    # is unchanged across consecutive steps -> the pipeline skips re-DMA of
    # the pe tile instead of re-fetching it once per batch element. ---
    grid = (n_s, n_d, B)
    return pl.pallas_call(
        _posenc_kernel_batch_inner,
        out_shape=jax.ShapeDtypeStruct((B, S, D), x.dtype),
        grid=grid,
        in_specs=[
            pl.BlockSpec((None, TS, TD), lambda s, d, b: (b, s, d)),
            pl.BlockSpec((TS, TD), lambda s, d, b: (s, d)),
        ],
        out_specs=pl.BlockSpec((None, TS, TD), lambda s, d, b: (b, s, d)),
        compiler_params=pltpu.CompilerParams(
            dimension_semantics=("parallel", "parallel", "parallel"),
            **compiler_kwargs,
        ),
    )(x, pe)


# ----------------------------------------------------------------------------
# PE table construction (mirrors the PyTorch __init__ buffer)
# ----------------------------------------------------------------------------
def make_positional_encoding_table(d_model, max_len=5000, dtype=jnp.float32):
    assert d_model % 2 == 0, "d_model must be even (same constraint as the torch code)"
    position = jnp.arange(max_len, dtype=jnp.float32)[:, None]            # (max_len, 1)
    div_term = jnp.exp(
        jnp.arange(0, d_model, 2, dtype=jnp.float32) * (-math.log(10000.0) / d_model)
    )                                                                      # (d_model//2,)
    angles = position * div_term                                           # (max_len, d_model//2)
    # Interleave: pe[:, 0::2] = sin, pe[:, 1::2] = cos
    pe = jnp.stack([jnp.sin(angles), jnp.cos(angles)], axis=-1).reshape(max_len, d_model)
    return pe.astype(dtype)


# ----------------------------------------------------------------------------
# Pure-JAX reference
# ----------------------------------------------------------------------------
def positional_encoding_reference(x, pe):
    S = x.shape[1]
    return x + pe[None, :S, :].astype(x.dtype)


if __name__ == "__main__":
    B, S, d_model = 2, 8, 32
    max_len = 64

    pe = make_positional_encoding_table(d_model, max_len=max_len)

    key = jax.random.PRNGKey(0)
    x = jax.random.normal(key, (B, S, d_model), jnp.float32)

    # Path 1: full batch inside one block (default for small B).
    out = positional_encoding_forward(x, pe)
    out = jax.block_until_ready(out)
    out_ref = positional_encoding_reference(x, pe)
    assert out.shape == (B, S, d_model)
    assert jnp.allclose(out, out_ref, atol=1e-6, rtol=1e-6)

    # Path 2: force the batch-innermost grid fallback and check it too.
    out2 = positional_encoding_forward(x, pe, batch_block_budget_bytes=0)
    out2 = jax.block_until_ready(out2)
    assert jnp.allclose(out2, out_ref, atol=1e-6, rtol=1e-6)

    print("KERNEL_OK")
</pallas_src>

<mosaic_0001>
module attributes {stable_mosaic.version = 11 : i64} {
  func.func @_posenc_kernel_full_batch(%arg0: i32, %arg1: i32, %arg2: memref<2x8x32xf32, #tpu.memory_space<vmem>>, %arg3: memref<8x32xf32, #tpu.memory_space<vmem>>, %arg4: memref<2x8x32xf32, #tpu.memory_space<vmem>>) attributes {dimension_semantics = [#tpu.dimension_semantics<parallel>, #tpu.dimension_semantics<parallel>], iteration_bounds = array<i64: 1, 1>, scalar_prefetch = 0 : i64, scratch_operands = 0 : i64, tpu.core_type = #tpu.core_type<tc>, window_params = [{transform_indices = @transform_0, window_bounds = array<i64: 2, 8, 32>}, {transform_indices = @transform_1, window_bounds = array<i64: 8, 32>}, {transform_indices = @transform_2, window_bounds = array<i64: 2, 8, 32>}]} {
    %c0 = arith.constant 0 : index
    %c0_0 = arith.constant 0 : index
    %c0_1 = arith.constant 0 : index
    %0 = vector.load %arg2[%c0, %c0_0, %c0_1] : memref<2x8x32xf32, #tpu.memory_space<vmem>>, vector<2x8x32xf32>
    %c0_2 = arith.constant 0 : index
    %c0_3 = arith.constant 0 : index
    %1 = vector.load %arg3[%c0_2, %c0_3] : memref<8x32xf32, #tpu.memory_space<vmem>>, vector<8x32xf32>
    %2 = vector.shape_cast %1 : vector<8x32xf32> to vector<1x8x32xf32>
    %3 = vector.broadcast %2 : vector<1x8x32xf32> to vector<2x8x32xf32>
    %4 = arith.addf %0, %3 : vector<2x8x32xf32>
    %c0_4 = arith.constant 0 : index
    %c0_5 = arith.constant 0 : index
    %c0_6 = arith.constant 0 : index
    %5 = vector.load %arg4[%c0_4, %c0_5, %c0_6] : memref<2x8x32xf32, #tpu.memory_space<vmem>>, vector<2x8x32xf32>
    tpu.vector_store %arg4[%c0_4, %c0_5, %c0_6], %4 {strides = array<i32>} : memref<2x8x32xf32, #tpu.memory_space<vmem>>, vector<2x8x32xf32>,
    return
  }
  func.func @transform_0(%arg0: i32, %arg1: i32) -> (i32, i32, i32) {
    %c0_i32 = arith.constant 0 : i32
    %c0_i32_0 = arith.constant 0 : i32
    return %c0_i32, %arg0, %arg1 : i32, i32, i32
  }
  func.func @transform_1(%arg0: i32, %arg1: i32) -> (i32, i32) {
    %c0_i32 = arith.constant 0 : i32
    return %arg0, %arg1 : i32, i32
  }
  func.func @transform_2(%arg0: i32, %arg1: i32) -> (i32, i32, i32) {
    %c0_i32 = arith.constant 0 : i32
    %c0_i32_0 = arith.constant 0 : i32
    return %c0_i32, %arg0, %arg1 : i32, i32, i32
  }
}

</mosaic_0001>

<bundles_post_ra>
// kernel: tpu_custom_call.1
= control target key start
LH: loop header
LB: loop body
LE: loop exit
PB: predicated region body
PF: predicated region fallthrough
CT: control target
= control target key end

     0   :  { %vm17_vm0 = vcmask 261120   ;;  %s102_s0 = inlined_call_operand.vmem [shape: f32[2,8,32], index: 0, kind: input, shape index: {}]   ;;  %s103_s1 = inlined_call_operand.vmem [shape: f32[64,32], index: 1, kind: input, shape index: {}]   ;;  %s104_s2 = inlined_call_operand.hbm [shape: f32[2,8,32], index: 2, kind: output, shape index: {}]  }
   0x1   :  { %v12_v0 = vld [vmem:[%s102_s0] sm:$0xff]  ;;  %v13_v2 = vld [vmem:[%s102_s0 + $0x8] sm:$0xff] }
   0x2   :  { %v14_v1 = vld [vmem:[%s103_s1] sm:$0xff] }
   0x3   :  { %v15_v3 = vadd.f32 %v14_v1, %v12_v0  ;;  %v16_v4 = vadd.f32 %v14_v1, %v13_v2 }
   0x4   :  { %7 = vsyncpa [#allocation3], 0  ;;  %s63_s15 = smov [#allocation2]  }
   0x5   :  { %s25_s16 = sshll.u32 %s63_s15, 4  ;;  %18 = vst.msk [vmem:[#allocation2] sm:$0xff] %vm17_vm0, %v15_v3  ;;  %19 = vst.msk [vmem:[#allocation2 + $0x8] sm:$0xff] %vm17_vm0, %v16_v4  ;;  %s26_s16 = int_to_ptr.vmem [resolvable:$true] %s25_s16 }
   0x6   :  { %s39_s17 = scalar_lea.vmem %s26_s16, 256  ;;  %p44_p1 = scmp.lt.s32.totalorder %s26_s16, %s26_s16 }
   0x7   :  { %p40_p0 = scmp.ne.s32.totalorder %s26_s16, %s39_s17  ;;  %p45_p2 = scmp.lt.s32.totalorder %s39_s17, %s39_s17 }
   0x9   :  { %p46_p3 = por %p45_p2, %p44_p1 }
   0xb   :  { %p47_p4 = pnand %p46_p3, %p40_p0 }
   0xd   :  { %50 = shalt.err (!%p47_p4)
}
   0xe   :  { %s51_s19 = scalar_lea.hbm %s104_s2, 256 }
   0xf   :  { %p52_p5 = scmp.ne.s32.totalorder %s104_s2, %s51_s19  ;;  %p55_p6 = scmp.lt.u32.totalorder %s51_s19, %s104_s2 }
  0x11   :  { %p57_p7 = pnand %p55_p6, %p52_p5 }
  0x13   :  { %60 = shalt.err (!%p57_p7)
}
  0x14   :  { %s64_s23 = smov 128   ;;  %s65_s24 = smov 8  }
  0x15   :  { %31 = dma.vmem_to_hbm [thread:$0]  %s26_s16, 256, %s104_s2, [#allocation3], %s64_s23, %s64_s23, %s65_s24  }
  0x16   :  { %61 = dma.done.wait [#allocation3], 256  }
  0x17   :  { %62 = vsyncadd [#allocation3], 4294967040 }
  0x18   :  { %35 = vsyncpa [#allocation3], 1 }

</bundles_post_ra>
